<compile_context>
chip_gen: v7x
topology: tpu7x:2x2x1
jax: 0.10.0
libtpu: 0.0.40
codegen_flags: <defaults>
</compile_context>

<pallas_src>
import jax
import jax.numpy as jnp
from jax.experimental import pallas as pl
from jax.experimental.pallas import tpu as pltpu


def _round_up(n, m):
    return ((n + m - 1) // m) * m


def _make_kernel(dims, compute_dtype):
    d_in, h1, h2, h3, d_out = dims
    in_sizes = (d_in, h1, h2, h3)
    out_sizes = (h1, h2, h3, d_out)

    def kernel(xT_ref, wp_ref, bp_ref, oT_ref):
        wp = wp_ref[...]          # [4, max_out, max_in] packed (zero-padded) weights
        bp = bp_ref[...]          # [4, max_out, 1]      packed (zero-padded) biases

        def layer(i, h):
            w = wp[i, :out_sizes[i], :in_sizes[i]]          # static slice
            b = bp[i, :out_sizes[i], :]                     # [out, 1] column
            return jnp.dot(w, h.astype(compute_dtype),
                           preferred_element_type=jnp.float32) + b

        # l1 + ReLU
        h = jnp.maximum(layer(0, xT_ref[...]), 0.0)
        # l2 + Tanh
        h = jnp.tanh(layer(1, h))
        # l3 + LogSigmoid (stable: min(x,0) - log1p(exp(-|x|)))
        z = layer(2, h)
        h = jnp.minimum(z, 0.0) - jnp.log1p(jnp.exp(-jnp.abs(z)))
        # l4 + ReLU
        h = jnp.maximum(layer(3, h), 0.0)
        oT_ref[...] = h.astype(oT_ref.dtype)

    return kernel


def linmodel_forward(x, params, *, tile_b=512, use_bf16=False):
    """Fused 4-layer MLP forward. x: [B, D_in] float32 -> [B, D_out] float32."""
    (w1, b1), (w2, b2), (w3, b3), (w4, b4) = params   # PyTorch layout: W [out,in], b [out]
    B, d_in = x.shape
    h1, h2, h3, d_out = w1.shape[0], w2.shape[0], w3.shape[0], w4.shape[0]
    dims = (d_in, h1, h2, h3, d_out)

    compute_dtype = jnp.bfloat16 if use_bf16 else jnp.float32

    # --- pack weights/biases into two grid-invariant zero-padded stacks ---
    max_out = max(h1, h2, h3, d_out)
    max_in = max(d_in, h1, h2, h3)

    def pad_w(w):
        return jnp.zeros((max_out, max_in), jnp.float32).at[:w.shape[0], :w.shape[1]].set(w)

    def pad_b(b):
        return jnp.zeros((max_out, 1), jnp.float32).at[:b.shape[0], 0].set(b)

    wp = jnp.stack([pad_w(w1), pad_w(w2), pad_w(w3), pad_w(w4)]).astype(compute_dtype)
    bp = jnp.stack([pad_b(b1), pad_b(b2), pad_b(b3), pad_b(b4)])       # biases stay f32

    # --- feature-major (batch-on-lanes) layout + batch padding/tiling ---
    xT = x.T.astype(compute_dtype)                 # [d_in, B]
    tb = _round_up(min(tile_b, _round_up(B, 128)), 128)
    Bp = _round_up(B, tb)
    if Bp != B:
        xT = jnp.pad(xT, ((0, 0), (0, Bp - B)))

    grid = (Bp // tb,)
    outT = pl.pallas_call(
        _make_kernel(dims, compute_dtype),
        out_shape=jax.ShapeDtypeStruct((d_out, Bp), jnp.float32),
        grid_spec=pltpu.PrefetchScalarGridSpec(
            num_scalar_prefetch=0,
            grid=grid,
            in_specs=[
                # lane-dense x tile: [d_in, tb] with the batch on the 128-lane axis
                pl.BlockSpec((d_in, tb), lambda i: (0, i)),
                # grid-invariant packed weights / biases (single resident block each)
                pl.BlockSpec(wp.shape, lambda i: (0, 0, 0)),
                pl.BlockSpec(bp.shape, lambda i: (0, 0, 0)),
            ],
            # lane-dense output tile: [d_out, tb] -> full-width stores
            out_specs=pl.BlockSpec((d_out, tb), lambda i: (0, i)),
        ),
        compiler_params=pltpu.CompilerParams(
            dimension_semantics=("parallel",)),
    )(xT, wp, bp)

    return outT[:, :B].T                           # trim padding, back to [B, d_out]


def init_linear(key, fan_in, fan_out):
    # Mimic PyTorch nn.Linear default init: U(-1/sqrt(fan_in), 1/sqrt(fan_in)).
    kw, kb = jax.random.split(key)
    bound = float(fan_in) ** -0.5
    w = jax.random.uniform(kw, (fan_out, fan_in), jnp.float32, -bound, bound)
    b = jax.random.uniform(kb, (fan_out,), jnp.float32, -bound, bound)
    return w, b


def reference_forward(x, params):
    (w1, b1), (w2, b2), (w3, b3), (w4, b4) = params
    h = jnp.maximum(x @ w1.T + b1, 0.0)
    h = jnp.tanh(h @ w2.T + b2)
    z = h @ w3.T + b3
    h = jnp.minimum(z, 0.0) - jnp.log1p(jnp.exp(-jnp.abs(z)))
    h = jnp.maximum(h @ w4.T + b4, 0.0)
    return h


if __name__ == "__main__":
    n_input_dim, h1, h2, h3, n_output_dim = 32, 64, 64, 32, 16

    key = jax.random.PRNGKey(0)
    kx1, kx2, k1, k2, k3, k4 = jax.random.split(key, 6)

    params = (
        init_linear(k1, n_input_dim, h1),
        init_linear(k2, h1, h2),
        init_linear(k3, h2, h3),
        init_linear(k4, h3, n_output_dim),
    )

    # Small batch that is NOT a multiple of the tile -> exercises padding + trim.
    x_small = jax.random.normal(kx1, (96, n_input_dim), jnp.float32)
    out_small = jax.block_until_ready(linmodel_forward(x_small, params))
    ref_small = reference_forward(x_small, params)
    assert out_small.shape == (96, n_output_dim)
    assert jnp.allclose(out_small, ref_small, atol=1e-4, rtol=1e-4)

    # Larger batch -> 2 parallel grid steps at tile_b=512 (both v7x TCs usable).
    x_big = jax.random.normal(kx2, (1024, n_input_dim), jnp.float32)
    out_big = jax.block_until_ready(linmodel_forward(x_big, params))
    ref_big = reference_forward(x_big, params)
    assert out_big.shape == (1024, n_output_dim)
    assert jnp.allclose(out_big, ref_big, atol=1e-4, rtol=1e-4)

    print("KERNEL_OK")
</pallas_src>

<mosaic_0001>
module attributes {stable_mosaic.version = 11 : i64} {
  func.func @kernel(%arg0: i32, %arg1: memref<32x128xf32, #tpu.memory_space<vmem>>, %arg2: memref<4x64x64xf32, #tpu.memory_space<vmem>>, %arg3: memref<4x64x1xf32, #tpu.memory_space<vmem>>, %arg4: memref<16x128xf32, #tpu.memory_space<vmem>>) attributes {dimension_semantics = [#tpu.dimension_semantics<parallel>], iteration_bounds = array<i64: 1>, scalar_prefetch = 0 : i64, scratch_operands = 0 : i64, tpu.core_type = #tpu.core_type<tc>, window_params = [{transform_indices = @transform_0, window_bounds = array<i64: 32, 128>}, {pipeline_mode = #tpu.pipeline_mode<synchronous>, transform_indices = @transform_1, window_bounds = array<i64: 4, 64, 64>}, {pipeline_mode = #tpu.pipeline_mode<synchronous>, transform_indices = @transform_2, window_bounds = array<i64: 4, 64, 1>}, {transform_indices = @transform_3, window_bounds = array<i64: 16, 128>}]} {
    %c0 = arith.constant 0 : index
    %c0_0 = arith.constant 0 : index
    %c0_1 = arith.constant 0 : index
    %0 = vector.load %arg2[%c0, %c0_0, %c0_1] : memref<4x64x64xf32, #tpu.memory_space<vmem>>, vector<4x64x64xf32>
    %c0_2 = arith.constant 0 : index
    %c0_3 = arith.constant 0 : index
    %c0_4 = arith.constant 0 : index
    %1 = vector.load %arg3[%c0_2, %c0_3, %c0_4] : memref<4x64x1xf32, #tpu.memory_space<vmem>>, vector<4x64x1xf32>
    %c0_5 = arith.constant 0 : index
    %c0_6 = arith.constant 0 : index
    %2 = vector.load %arg1[%c0_5, %c0_6] : memref<32x128xf32, #tpu.memory_space<vmem>>, vector<32x128xf32>
    %3 = vector.extract_strided_slice %0 {offsets = [0, 0, 0], sizes = [1, 64, 32], strides = [1, 1, 1]} : vector<4x64x64xf32> to vector<1x64x32xf32>
    %4 = vector.shape_cast %3 : vector<1x64x32xf32> to vector<64x32xf32>
    %5 = vector.extract_strided_slice %1 {offsets = [0, 0, 0], sizes = [1, 64, 1], strides = [1, 1, 1]} : vector<4x64x1xf32> to vector<1x64x1xf32>
    %6 = vector.shape_cast %5 : vector<1x64x1xf32> to vector<64x1xf32>
    %cst = arith.constant dense<0.000000e+00> : vector<64x128xf32>
    %7 = tpu.matmul %4, %2, %cst {dimension_numbers = #tpu.dot_dimension_numbers<[1], [0], [0], [1], [0, 0, 1, 1], [], []>} : vector<64x32xf32>, vector<32x128xf32>, vector<64x128xf32> -> vector<64x128xf32>
    %8 = vector.broadcast %6 : vector<64x1xf32> to vector<64x128xf32>
    %9 = arith.addf %7, %8 : vector<64x128xf32>
    %cst_7 = arith.constant 0.000000e+00 : f32
    %10 = vector.broadcast %cst_7 : f32 to vector<64x128xf32>
    %11 = arith.maximumf %9, %10 : vector<64x128xf32>
    %12 = vector.extract_strided_slice %0 {offsets = [1, 0, 0], sizes = [1, 64, 64], strides = [1, 1, 1]} : vector<4x64x64xf32> to vector<1x64x64xf32>
    %13 = vector.shape_cast %12 : vector<1x64x64xf32> to vector<64x64xf32>
    %14 = vector.extract_strided_slice %1 {offsets = [1, 0, 0], sizes = [1, 64, 1], strides = [1, 1, 1]} : vector<4x64x1xf32> to vector<1x64x1xf32>
    %15 = vector.shape_cast %14 : vector<1x64x1xf32> to vector<64x1xf32>
    %cst_8 = arith.constant dense<0.000000e+00> : vector<64x128xf32>
    %16 = tpu.matmul %13, %11, %cst_8 {dimension_numbers = #tpu.dot_dimension_numbers<[1], [0], [0], [1], [0, 0, 1, 1], [], []>} : vector<64x64xf32>, vector<64x128xf32>, vector<64x128xf32> -> vector<64x128xf32>
    %17 = vector.broadcast %15 : vector<64x1xf32> to vector<64x128xf32>
    %18 = arith.addf %16, %17 : vector<64x128xf32>
    %19 = math.tanh %18 : vector<64x128xf32>
    %20 = vector.extract_strided_slice %0 {offsets = [2, 0, 0], sizes = [1, 32, 64], strides = [1, 1, 1]} : vector<4x64x64xf32> to vector<1x32x64xf32>
    %21 = vector.shape_cast %20 : vector<1x32x64xf32> to vector<32x64xf32>
    %22 = vector.extract_strided_slice %1 {offsets = [2, 0, 0], sizes = [1, 32, 1], strides = [1, 1, 1]} : vector<4x64x1xf32> to vector<1x32x1xf32>
    %23 = vector.shape_cast %22 : vector<1x32x1xf32> to vector<32x1xf32>
    %cst_9 = arith.constant dense<0.000000e+00> : vector<32x128xf32>
    %24 = tpu.matmul %21, %19, %cst_9 {dimension_numbers = #tpu.dot_dimension_numbers<[1], [0], [0], [1], [0, 0, 1, 1], [], []>} : vector<32x64xf32>, vector<64x128xf32>, vector<32x128xf32> -> vector<32x128xf32>
    %25 = vector.broadcast %23 : vector<32x1xf32> to vector<32x128xf32>
    %26 = arith.addf %24, %25 : vector<32x128xf32>
    %cst_10 = arith.constant 0.000000e+00 : f32
    %27 = vector.broadcast %cst_10 : f32 to vector<32x128xf32>
    %28 = arith.minimumf %26, %27 : vector<32x128xf32>
    %29 = math.absf %26 : vector<32x128xf32>
    %cst_11 = arith.constant 0.000000e+00 : f32
    %30 = vector.broadcast %cst_11 : f32 to vector<32x128xf32>
    %31 = arith.subf %30, %29 : vector<32x128xf32>
    %32 = math.exp %31 : vector<32x128xf32>
    %33 = math.log1p %32 : vector<32x128xf32>
    %34 = arith.subf %28, %33 : vector<32x128xf32>
    %35 = vector.extract_strided_slice %0 {offsets = [3, 0, 0], sizes = [1, 16, 32], strides = [1, 1, 1]} : vector<4x64x64xf32> to vector<1x16x32xf32>
    %36 = vector.shape_cast %35 : vector<1x16x32xf32> to vector<16x32xf32>
    %37 = vector.extract_strided_slice %1 {offsets = [3, 0, 0], sizes = [1, 16, 1], strides = [1, 1, 1]} : vector<4x64x1xf32> to vector<1x16x1xf32>
    %38 = vector.shape_cast %37 : vector<1x16x1xf32> to vector<16x1xf32>
    %cst_12 = arith.constant dense<0.000000e+00> : vector<16x128xf32>
    %39 = tpu.matmul %36, %34, %cst_12 {dimension_numbers = #tpu.dot_dimension_numbers<[1], [0], [0], [1], [0, 0, 1, 1], [], []>} : vector<16x32xf32>, vector<32x128xf32>, vector<16x128xf32> -> vector<16x128xf32>
    %40 = vector.broadcast %38 : vector<16x1xf32> to vector<16x128xf32>
    %41 = arith.addf %39, %40 : vector<16x128xf32>
    %cst_13 = arith.constant 0.000000e+00 : f32
    %42 = vector.broadcast %cst_13 : f32 to vector<16x128xf32>
    %43 = arith.maximumf %41, %42 : vector<16x128xf32>
    %c0_14 = arith.constant 0 : index
    %c0_15 = arith.constant 0 : index
    %44 = vector.load %arg4[%c0_14, %c0_15] : memref<16x128xf32, #tpu.memory_space<vmem>>, vector<16x128xf32>
    tpu.vector_store %arg4[%c0_14, %c0_15], %43 {strides = array<i32>} : memref<16x128xf32, #tpu.memory_space<vmem>>, vector<16x128xf32>,
    return
  }
  func.func @transform_0(%arg0: i32) -> (i32, i32) {
    %c0_i32 = arith.constant 0 : i32
    %c0_i32_0 = arith.constant 0 : i32
    return %c0_i32, %arg0 : i32, i32
  }
  func.func @transform_1(%arg0: i32) -> (i32, i32, i32) {
    %c0_i32 = arith.constant 0 : i32
    %c0_i32_0 = arith.constant 0 : i32
    %c0_i32_1 = arith.constant 0 : i32
    %c0_i32_2 = arith.constant 0 : i32
    return %c0_i32, %c0_i32_0, %c0_i32_1 : i32, i32, i32
  }
  func.func @transform_2(%arg0: i32) -> (i32, i32, i32) {
    %c0_i32 = arith.constant 0 : i32
    %c0_i32_0 = arith.constant 0 : i32
    %c0_i32_1 = arith.constant 0 : i32
    %c0_i32_2 = arith.constant 0 : i32
    return %c0_i32, %c0_i32_0, %c0_i32_1 : i32, i32, i32
  }
  func.func @transform_3(%arg0: i32) -> (i32, i32) {
    %c0_i32 = arith.constant 0 : i32
    %c0_i32_0 = arith.constant 0 : i32
    return %c0_i32, %arg0 : i32, i32
  }
}

</mosaic_0001>

<bundles_post_ra>
// kernel: tpu_custom_call.1
= control target key start
LH: loop header
LB: loop body
LE: loop exit
PB: predicated region body
PF: predicated region fallthrough
CT: control target
= control target key end

     0   :  { %8 = vsyncpa [#allocation3], 0  ;;  %s1227_s0 = inlined_call_operand.hbm [shape: f32[32,128], index: 0, kind: input, shape index: {}]   ;;  %s1228_s1 = inlined_call_operand.vmem [shape: f32[4,64,64], index: 1, kind: input, shape index: {}]   ;;  %s1229_s2 = inlined_call_operand.vmem [shape: f32[4,64,1], index: 2, kind: input, shape index: {}]   ;;  %s1230_s3 = inlined_call_operand.hbm [shape: f32[16,128], index: 3, kind: output, shape index: {}]  }
   0x1   :  { %9 = vsyncpa [#allocation4], 0  ;;  %s1006_s12 = smov [#allocation2]   ;;  %s958_s16 = scalar_lea.hbm %s1227_s0, 512 }
   0x2   :  { %s15_s13 = sshll.u32 %s1006_s12, 4  ;;  %p959_p0 = scmp.ne.s32.totalorder %s1227_s0, %s958_s16  ;;  %s16_s13 = int_to_ptr.vmem [resolvable:$true] %s15_s13 }
   0x3   :  { %p962_p1 = scmp.lt.u32.totalorder %s958_s16, %s1227_s0 }
   0x5   :  { %p964_p2 = pnand %p962_p1, %p959_p0 }
   0x7   :  { %967 = shalt.err (!%p964_p2)
}
   0x8   :  { %s968_s21 = scalar_lea.vmem %s16_s13, 512  ;;  %p973_p4 = scmp.lt.s32.totalorder %s16_s13, %s16_s13 }
   0x9   :  { %p969_p3 = scmp.ne.s32.totalorder %s16_s13, %s968_s21  ;;  %p974_p5 = scmp.lt.s32.totalorder %s968_s21, %s968_s21 }
   0xb   :  { %p975_p6 = por %p974_p5, %p973_p4 }
   0xd   :  { %p976_p7 = pnand %p975_p6, %p969_p3 }
   0xf   :  { %979 = shalt.err (!%p976_p7)
}
  0x10   :  { %s1007_s22 = smov 128   ;;  %s1008_s23 = smov 8  }
  0x11   :  { %21 = dma.hbm_to_vmem [thread:$0]  %s1227_s0, 512, %s16_s13, [#allocation3], %s1007_s22, %s1007_s22, %s1008_s23  }
  0x12   :  { %1002 = dma.done.wait [#allocation3], 512  }
  0x13   :  { %1003 = vsyncadd [#allocation3], 4294966784  ;;  %v1009_v0 = vmov 0   ;;  %vm117_vm0 = vcmask 261120   ;;  %v73_v1 = vld [vmem:[#allocation2] sm:$0xff]  ;;  %v74_v2 = vld [vmem:[#allocation2 + $0x8] sm:$0xff] }
  0x14   :  { %924 = vset.pattern.permute.xlu0 %v1009_v0  ;;  %925 = vset.pattern.permute.xlu1 %v1009_v0  ;;  %v75_v3 = vld [vmem:[#allocation2 + $0x10] sm:$0xff]  ;;  %v871_v4 = vpack.c.bf16 %v74_v2, %v73_v1  ;;  %v76_v5 = vld [vmem:[#allocation2 + $0x18] sm:$0xff]  ;;  %v29_v6 = vld [vmem:[%s1228_s1] sm:$0xff]  ;;  %vm295_vm1 = vcmask 523264   ;;  %s1010_s7 = smov [#allocation5]  }
  0x15   :  { %v875_v7 = vpack.c.bf16 %v76_v5, %v75_v3  ;;  %798 = vmatprep.mubr.msk.f32.mxu0 %vm117_vm0, %v29_v6  ;;  %v51_v8 = vld [vmem:[%s1229_s2] sm:$0xff]  ;;  %v53_v9 = vld [vmem:[%s1229_s2 + $0x10] sm:$0xff]  ;;  %v52_v10 = vld [vmem:[%s1229_s2 + $0x8] sm:$0xff] }
  0x16   :  { %872 = vmatprep.subr.bf16.mxu0 %v871_v4  ;;  %79 = vperm.xlu0 %924, %v51_v8   ;;  %v54_v11 = vld [vmem:[%s1229_s2 + $0x18] sm:$0xff]  ;;  %v30_v12 = vld [vmem:[%s1228_s1 + $0x8] sm:$0xff]  ;;  %v31_v13 = vld [vmem:[%s1228_s1 + $0x10] sm:$0xff] }
  0x17   :  { %874 = vmatpush3.bf16.msra.mxu0 %v871_v4  ;;  %89 = vperm.xlu1 %925, %v53_v9   ;;  %v55_v14 = vld [vmem:[%s1229_s2 + $0x20] sm:$0xff]  ;;  %v56_v15 = vld [vmem:[%s1229_s2 + $0x28] sm:$0xff]  ;;  %v32_v16 = vld [vmem:[%s1228_s1 + $0x18] sm:$0xff] }
  0x18   :  { %876 = vmatprep.subr.bf16.mxu0 %v875_v7  ;;  %v33_v17 = vld [vmem:[%s1228_s1 + $0x20] sm:$0xff]  ;;  %v57_v18 = vld [vmem:[%s1229_s2 + $0x30] sm:$0xff]  ;;  %v58_v19 = vld [vmem:[%s1229_s2 + $0x38] sm:$0xff] }
  0x19   :  { %v34_v20 = vld [vmem:[%s1228_s1 + $0x28] sm:$0xff]  ;;  %v35_v21 = vld [vmem:[%s1228_s1 + $0x30] sm:$0xff]  ;;  %v59_v22 = vld [vmem:[%s1229_s2 + $0x40] sm:$0xff] }
  0x1a   :  { %84 = vperm.xlu0 %924, %v52_v10   ;;  %v60_v23 = vld [vmem:[%s1229_s2 + $0x48] sm:$0xff]  ;;  %v36_v24 = vld [vmem:[%s1228_s1 + $0x38] sm:$0xff]  ;;  %v61_v25 = vld [vmem:[%s1229_s2 + $0x50] sm:$0xff] }
  0x1b   :  { %878 = vmatpush3.bf16.msra.mxu0 %v875_v7  ;;  %94 = vperm.xlu1 %925, %v54_v11   ;;  %v62_v26 = vld [vmem:[%s1229_s2 + $0x58] sm:$0xff]  ;;  %v63_v27 = vld [vmem:[%s1229_s2 + $0x60] sm:$0xff]  ;;  %v64_v28 = vld [vmem:[%s1229_s2 + $0x68] sm:$0xff] }
  0x1c   :  { %v65_v29 = vld [vmem:[%s1229_s2 + $0x70] sm:$0xff]  ;;  %v66_v30 = vld [vmem:[%s1229_s2 + $0x78] sm:$0xff]  ;;  %v67_v31 = vld [vmem:[%s1229_s2 + $0x80] sm:$0xff] }
  0x1d   :  { %v68_v32 = vld [vmem:[%s1229_s2 + $0x88] sm:$0xff]  ;;  %v69_v33 = vld [vmem:[%s1229_s2 + $0x90] sm:$0xff]  ;;  %v70_v34 = vld [vmem:[%s1229_s2 + $0x98] sm:$0xff] }
  0x1e   :  { %799 = vmatmul.mubr.msk.f32.vlgmr.msra.gmra.mrb[0].mxu0 %vm117_vm0, %v30_v12  ;;  %99 = vperm.xlu0 %924, %v55_v14   ;;  %v71_v35 = vld [vmem:[%s1229_s2 + $0xc0] sm:$0xff]  ;;  %v72_v36 = vld [vmem:[%s1229_s2 + $0xc8] sm:$0xff]  ;;  %v39_v11 = vld [vmem:[%s1228_s1 + $0x50] sm:$0xff]  ;;  %s710_s2 = sshll.u32 %s1010_s7, 4  ;;  %s711_s2 = int_to_ptr.vmem [resolvable:$true] %s710_s2 }
  0x1f   :  { %801 = vmatprep.mubr.msk.f32.mxu0 %vm117_vm0, %v31_v13  ;;  %104 = vperm.xlu1 %925, %v56_v15   ;;  %v37_v37 = vld [vmem:[%s1228_s1 + $0x40] sm:$0xff]  ;;  %v38_v10 = vld [vmem:[%s1228_s1 + $0x48] sm:$0xff]  ;;  %v40_v12 = vld [vmem:[%s1228_s1 + $0x58] sm:$0xff]  ;;  %s980_s8 = scalar_lea.vmem %s711_s2, 256  ;;  %p985_p9 = scmp.lt.s32.totalorder %s711_s2, %s711_s2 }
  0x20   :  { %826 = vmatprep.mubr.msk.f32.mxu1 %vm295_vm1, %v37_v37  ;;  %v41_v13 = vld [vmem:[%s1228_s1 + $0x60] sm:$0xff]  ;;  %v42_v14 = vld [vmem:[%s1228_s1 + $0x68] sm:$0xff]  ;;  %v43_v15 = vld [vmem:[%s1228_s1 + $0x70] sm:$0xff]  ;;  %p981_p8 = scmp.ne.s32.totalorder %s711_s2, %s980_s8  ;;  %p986_p10 = scmp.lt.s32.totalorder %s980_s8, %s980_s8 }
  0x22   :  { %802 = vmatmul.mubr.msk.f32.gmra.mrb[2].mxu0 %vm117_vm0, %v32_v16  ;;  %109 = vperm.xlu0 %924, %v57_v18   ;;  %v44_v16 = vld [vmem:[%s1228_s1 + $0x78] sm:$0xff]  ;;  %p987_p11 = por %p986_p10, %p985_p9 }
  0x23   :  { %804 = vmatprep.mubr.msk.f32.mxu0 %vm117_vm0, %v33_v17  ;;  %114 = vperm.xlu1 %925, %v58_v19   ;;  %v45_v17 = vld [vmem:[%s1228_s1 + $0x80] sm:$0xff] }
  0x24   :  { %p988_p12 = pnand %p987_p11, %p981_p8 }
  0x26   :  { %805 = vmatmul.mubr.msk.f32.gmra.mrb[4].mxu0 %vm117_vm0, %v34_v20  ;;  %257 = vperm.xlu0 %924, %v59_v22  }
  0x27   :  { %807 = vmatprep.mubr.msk.f32.mxu0 %vm117_vm0, %v35_v21  ;;  %262 = vperm.xlu1 %925, %v60_v23  }
  0x2a   :  { %808 = vmatmul.mubr.msk.f32.gmra.mrb[6].mxu0 %vm117_vm0, %v36_v24  ;;  %267 = vperm.xlu0 %924, %v61_v25  }
  0x2b   :  { %272 = vperm.xlu1 %925, %v62_v26   ;;  %854 = vmatprep.mubr.msk.f32.mxu0 %vm295_vm1, %v45_v17 }
  0x2e   :  { %277 = vperm.xlu0 %924, %v63_v27  }
  0x2f   :  { %282 = vperm.xlu1 %925, %v64_v28  }
  0x32   :  { %287 = vperm.xlu0 %924, %v65_v29  }
  0x33   :  { %292 = vperm.xlu1 %925, %v66_v30  }
  0x36   :  { %435 = vperm.xlu0 %924, %v67_v31  }
  0x37   :  { %440 = vperm.xlu1 %925, %v68_v32  }
  0x3a   :  { %445 = vperm.xlu0 %924, %v69_v33  }
  0x3b   :  { %450 = vperm.xlu1 %925, %v70_v34  }
  0x3e   :  { %612 = vperm.xlu0 %924, %v71_v35  }
  0x3f   :  { %617 = vperm.xlu1 %925, %v72_v36  }
  0x95   :  { %v80_v38 = vpop.permute.xlu0 %79 }
  0x96   :  { %v90_v39 = vpop.permute.xlu1 %89 }
  0x99   :  { %v85_v40 = vpop.permute.xlu0 %84 }
  0x9a   :  { %v95_v41 = vpop.permute.xlu1 %94 }
  0x9d   :  { %v100_v54 = vpop.permute.xlu0 %99 }
  0x9e   :  { %v105_v51 = vpop.permute.xlu1 %104 }
  0xa1   :  { %v110_v2 = vpop.permute.xlu0 %109 }
  0xa2   :  { %v115_v63 = vpop.permute.xlu1 %114 }
  0xa5   :  { %v258_v19 = vpop.permute.xlu0 %257 }
  0xa6   :  { %v263_v18 = vpop.permute.xlu1 %262 }
  0xa9   :  { %v268_v22 = vpop.permute.xlu0 %267 }
  0xaa   :  { %v273_v20 = vpop.permute.xlu1 %272 }
  0xad   :  { %v278_v31 = vpop.permute.xlu0 %277 }
  0xae   :  { %v283_v29 = vpop.permute.xlu1 %282 }
  0xb2   :  { %v293_v36 = vpop.permute.xlu1 %292 }
  0xf1   :  { %v800_v42 = vpop.f32.mrb[0].mxu0 }
  0xf2   :  { %v214_v43 = vadd.f32 %v800_v42, %v85_v40  ;;  %v208_v44 = vpop.f32.mrb[1].mxu0 }
  0xf3   :  { %v209_v45 = vadd.f32 %v208_v44, %v80_v38 }
  0xf4   :  { %v248_v46 = vmax.f32 %v214_v43, 0.0 }
  0xf5   :  { %v247_v47 = vmax.f32 %v209_v45, 0.0  ;;  %v803_v48 = vpop.f32.mrb[2].mxu0 }
  0xf6   :  { %v224_v49 = vadd.f32 %v803_v48, %v95_v41  ;;  %v218_v50 = vpop.f32.mrb[3].mxu0 }
  0xf7   :  { %v219_v52 = vadd.f32 %v218_v50, %v90_v39  ;;  %v879_v53 = vpack.c.bf16 %v248_v46, %v247_v47  ;;  %v288_v39 = vpop.permute.xlu0 %287 }
  0xf8   :  { %v250_v55 = vmax.f32 %v224_v49, 0.0 }
  0xf9   :  { %v249_v56 = vmax.f32 %v219_v52, 0.0  ;;  %v806_v57 = vpop.f32.mrb[4].mxu0  ;;  %880 = vmatprep.subr.bf16.mxu1 %v879_v53 }
  0xfa   :  { %v234_v58 = vadd.f32 %v806_v57, %v105_v51  ;;  %v228_v59 = vpop.f32.mrb[5].mxu0  ;;  %882 = vmatpush3.bf16.msra.mxu1 %v879_v53  ;;  %v49_v57 = vld [vmem:[%s1228_s1 + $0xc0] sm:$0xff] }
  0xfb   :  { %v883_v60 = vpack.c.bf16 %v250_v55, %v249_v56  ;;  %v229_v61 = vadd.f32 %v228_v59, %v100_v54  ;;  %v46_v54 = vld [vmem:[%s1228_s1 + $0x88] sm:$0xff]  ;;  %v47_v55 = vld [vmem:[%s1228_s1 + $0x90] sm:$0xff]  ;;  %v48_v56 = vld [vmem:[%s1228_s1 + $0x98] sm:$0xff]  ;;  %v436_v59 = vpop.permute.xlu0 %435 }
  0xfc   :  { %v252_v62 = vmax.f32 %v234_v58, 0.0  ;;  %v441_v58 = vpop.permute.xlu1 %440 }
  0xfd   :  { %v251_v0 = vmax.f32 %v229_v61, 0.0  ;;  %v809_v1 = vpop.f32.mrb[6].mxu0  ;;  %884 = vmatprep.subr.bf16.mxu1 %v883_v60 }
  0xfe   :  { %v244_v3 = vadd.f32 %v809_v1, %v115_v63  ;;  %v238_v4 = vpop.f32.mrb[7].mxu0  ;;  %886 = vmatpush3.bf16.msra.mxu1 %v883_v60 }
  0xff   :  { %v887_v5 = vpack.c.bf16 %v252_v62, %v251_v0  ;;  %v239_v6 = vadd.f32 %v238_v4, %v110_v2  ;;  %v446_v4 = vpop.permute.xlu0 %445 }
 0x100   :  { %v254_v7 = vmax.f32 %v244_v3, 0.0  ;;  %v451_v1 = vpop.permute.xlu1 %450 }
 0x101   :  { %v253_v8 = vmax.f32 %v239_v6, 0.0  ;;  %888 = vmatprep.subr.bf16.mxu1 %v887_v5 }
 0x102   :  { %890 = vmatpush3.bf16.msra.mxu1 %v887_v5 }
 0x103   :  { %v891_v9 = vpack.c.bf16 %v254_v7, %v253_v8 }
 0x105   :  { %892 = vmatprep.subr.bf16.mxu1 %v891_v9 }
 0x106   :  { %894 = vmatpush3.bf16.msra.mxu1 %v891_v9 }
 0x109   :  { %827 = vmatmul.mubr.msk.f32.vlgmr.msra.gmra.mrb[0].mxu1 %vm295_vm1, %v38_v10 }
 0x10a   :  { %829 = vmatprep.mubr.msk.f32.mxu1 %vm295_vm1, %v39_v11 }
 0x10d   :  { %830 = vmatmul.mubr.msk.f32.gmra.mrb[2].mxu1 %vm295_vm1, %v40_v12 }
 0x10e   :  { %832 = vmatprep.mubr.msk.f32.mxu1 %vm295_vm1, %v41_v13 }
 0x111   :  { %833 = vmatmul.mubr.msk.f32.gmra.mrb[4].mxu1 %vm295_vm1, %v42_v14 }
 0x112   :  { %835 = vmatprep.mubr.msk.f32.mxu1 %vm295_vm1, %v43_v15 }
 0x115   :  { %836 = vmatmul.mubr.msk.f32.gmra.mrb[6].mxu1 %vm295_vm1, %v44_v16 }
 0x1dc   :  { %v828_v21 = vpop.f32.mrb[0].mxu1 }
 0x1dd   :  { %v392_v23 = vadd.f32 %v828_v21, %v263_v18  ;;  %v386_v24 = vpop.f32.mrb[1].mxu1 }
 0x1de   :  { %v387_v25 = vadd.f32 %v386_v24, %v258_v19 }
 0x1df   :  { %926 = vtanh.f32 %v392_v23 }
 0x1e0   :  { %928 = vtanh.f32 %v387_v25  ;;  %v831_v26 = vpop.f32.mrb[2].mxu1 }
 0x1e1   :  { %v402_v27 = vadd.f32 %v831_v26, %v273_v20  ;;  %v396_v28 = vpop.f32.mrb[3].mxu1 }
 0x1e2   :  { %v397_v30 = vadd.f32 %v396_v28, %v268_v22 }
 0x1e3   :  { %930 = vtanh.f32 %v402_v27 }
 0x1e4   :  { %932 = vtanh.f32 %v397_v30  ;;  %v834_v32 = vpop.f32.mrb[4].mxu1 }
 0x1e5   :  { %v412_v33 = vadd.f32 %v834_v32, %v283_v29  ;;  %v406_v34 = vpop.f32.mrb[5].mxu1 }
 0x1e6   :  { %v407_v35 = vadd.f32 %v406_v34, %v278_v31 }
 0x1e7   :  { %934 = vtanh.f32 %v412_v33 }
 0x1e8   :  { %936 = vtanh.f32 %v407_v35  ;;  %v837_v37 = vpop.f32.mrb[6].mxu1 }
 0x1e9   :  { %v927_v38 = vpop.eup %926  ;;  %v422_v40 = vadd.f32 %v837_v37, %v293_v36  ;;  %v416_v41 = vpop.f32.mrb[7].mxu1 }
 0x1ea   :  { %v929_v42 = vpop.eup %928  ;;  %v417_v43 = vadd.f32 %v416_v41, %v288_v39 }
 0x1eb   :  { %938 = vtanh.f32 %v422_v40  ;;  %v895_v44 = vpack.c.bf16 %v927_v38, %v929_v42 }
 0x1ec   :  { %940 = vtanh.f32 %v417_v43 }
 0x1ed   :  { %v931_v45 = vpop.eup %930  ;;  %896 = vmatprep.subr.bf16.mxu0 %v895_v44 }
 0x1ee   :  { %v933_v46 = vpop.eup %932  ;;  %898 = vmatpush3.bf16.msra.mxu0 %v895_v44 }
 0x1ef   :  { %v899_v47 = vpack.c.bf16 %v931_v45, %v933_v46 }
 0x1f1   :  { %v935_v48 = vpop.eup %934  ;;  %900 = vmatprep.subr.bf16.mxu0 %v899_v47 }
 0x1f2   :  { %v937_v49 = vpop.eup %936  ;;  %902 = vmatpush3.bf16.msra.mxu0 %v899_v47 }
 0x1f3   :  { %v903_v50 = vpack.c.bf16 %v935_v48, %v937_v49 }
 0x1f5   :  { %v939_v51 = vpop.eup %938  ;;  %904 = vmatprep.subr.bf16.mxu0 %v903_v50 }
 0x1f6   :  { %v941_v52 = vpop.eup %940  ;;  %906 = vmatpush3.bf16.msra.mxu0 %v903_v50 }
 0x1f7   :  { %v907_v53 = vpack.c.bf16 %v939_v51, %v941_v52 }
 0x1f9   :  { %908 = vmatprep.subr.bf16.mxu0 %v907_v53 }
 0x1fa   :  { %910 = vmatpush3.bf16.msra.mxu0 %v907_v53 }
 0x1fd   :  { %855 = vmatmul.mubr.msk.f32.vlgmr.msra.gmra.mrb[8].mxu0 %vm295_vm1, %v46_v54 }
 0x1fe   :  { %857 = vmatprep.mubr.msk.f32.mxu0 %vm295_vm1, %v47_v55 }
 0x201   :  { %858 = vmatmul.mubr.msk.f32.gmra.mrb[10].mxu0 %vm295_vm1, %v48_v56 }
 0x202   :  { %868 = vmatprep.mubr.msk.f32.mxu0 %vm117_vm0, %v49_v57 }
 0x2d0   :  { %v856_v60 = vpop.f32.mrb[8].mxu0 }
 0x2d1   :  { %v537_v61 = vadd.f32 %v856_v60, %v441_v58  ;;  %v531_v62 = vpop.f32.mrb[9].mxu0 }
 0x2d2   :  { %v1196_v63 = vadd.f32 %v531_v62, %v436_v59 }
 0x2d3   :  { %v555_v0 = vand.u32 2147483647, %v537_v61  ;;  %v551_v35 = vmin.f32 %v537_v61, 0.0 }
 0x2d4   :  { %v554_v2 = vand.u32 2147483647, %v1196_v63  ;;  %v859_v3 = vpop.f32.mrb[10].mxu0  ;;  %v550_v45 = vmin.f32 %v1196_v63, 0.0 }
 0x2d5   :  { %v559_v5 = vsub.f32 0.0, %v555_v0  ;;  %v1199_v6 = vadd.f32 %v859_v3, %v451_v1  ;;  %v541_v7 = vpop.f32.mrb[11].mxu0  ;;  %v50_v0 = vld [vmem:[%s1228_s1 + $0xc8] sm:$0xff]  ;;  %v618_v1 = vpop.permute.xlu1 %617 }
 0x2d6   :  { %v558_v8 = vsub.f32 0.0, %v554_v2  ;;  %v1201_v9 = vadd.f32 %v541_v7, %v446_v4  ;;  %v613_v3 = vpop.permute.xlu0 %612 }
 0x2d7   :  { %v564_v10 = vmul.f32 1.442695, %v559_v5  ;;  %v557_v11 = vand.u32 2147483647, %v1199_v6  ;;  %v553_v54 = vmin.f32 %v1199_v6, 0.0 }
 0x2d8   :  { %v562_v12 = vmul.f32 1.442695, %v558_v8  ;;  %v556_v13 = vand.u32 2147483647, %v1201_v9  ;;  %v552_v58 = vmin.f32 %v1201_v9, 0.0 }
 0x2d9   :  { %942 = vpow2.f32 %v564_v10  ;;  %v561_v14 = vsub.f32 0.0, %v557_v11 }
 0x2da   :  { %944 = vpow2.f32 %v562_v12  ;;  %v560_v15 = vsub.f32 0.0, %v556_v13 }
 0x2db   :  { %v568_v16 = vmul.f32 1.442695, %v561_v14 }
 0x2dc   :  { %v566_v17 = vmul.f32 1.442695, %v560_v15 }
 0x2dd   :  { %946 = vpow2.f32 %v568_v16 }
 0x2de   :  { %948 = vpow2.f32 %v566_v17 }
 0x2e3   :  { %v943_v18 = vpop.eup %942 }
 0x2e4   :  { %v945_v19 = vpop.eup %944  ;;  %v579_v20 = vadd.f32 1.0, %v943_v18  ;;  %v582_v25 = vmul.f32 -0.5, %v943_v18  ;;  %v585_v29 = vand.u32 2147483647, %v943_v18 }
 0x2e5   :  { %v570_v21 = vadd.f32 1.0, %v945_v19  ;;  %v573_v27 = vmul.f32 -0.5, %v945_v19  ;;  %v576_v33 = vand.u32 2147483647, %v945_v19 }
 0x2e6   :  { %950 = vlog2.f32 %v579_v20  ;;  %v583_v28 = vadd.f32 1.0, %v582_v25  ;;  %vm586_vm2 = vcmp.lt.f32.partialorder %v585_v29, 0.0004427343 }
 0x2e7   :  { %v947_v22 = vpop.eup %946  ;;  %952 = vlog2.f32 %v570_v21  ;;  %v574_v31 = vadd.f32 1.0, %v573_v27  ;;  %vm577_vm3 = vcmp.lt.f32.partialorder %v576_v33, 0.0004427343 }
 0x2e8   :  { %v949_v23 = vpop.eup %948  ;;  %v597_v24 = vadd.f32 1.0, %v947_v22  ;;  %v600_v30 = vmul.f32 -0.5, %v947_v22  ;;  %v584_v38 = vmul.f32 %v943_v18, %v583_v28  ;;  %v603_v42 = vand.u32 2147483647, %v947_v22 }
 0x2e9   :  { %v588_v26 = vadd.f32 1.0, %v949_v23  ;;  %v591_v32 = vmul.f32 -0.5, %v949_v23  ;;  %v575_v41 = vmul.f32 %v945_v19, %v574_v31  ;;  %v594_v46 = vand.u32 2147483647, %v949_v23 }
 0x2ea   :  { %954 = vlog2.f32 %v597_v24  ;;  %v601_v39 = vadd.f32 1.0, %v600_v30  ;;  %vm604_vm4 = vcmp.lt.f32.partialorder %v603_v42, 0.0004427343 }
 0x2eb   :  { %956 = vlog2.f32 %v588_v26  ;;  %v592_v43 = vadd.f32 1.0, %v591_v32  ;;  %vm595_vm5 = vcmp.lt.f32.partialorder %v594_v46, 0.0004427343 }
 0x2ec   :  { %v602_v53 = vmul.f32 %v947_v22, %v601_v39 }
 0x2ed   :  { %v593_v56 = vmul.f32 %v949_v23, %v592_v43 }
 0x2f0   :  { %v951_v34 = vpop.eup %950 }
 0x2f1   :  { %v953_v36 = vpop.eup %952  ;;  %v581_v37 = vmul.f32 0.6931472, %v951_v34 }
 0x2f2   :  { %v572_v40 = vmul.f32 0.6931472, %v953_v36 }
 0x2f3   :  { %v587_v44 = vsel %vm586_vm2, %v584_v38, %v581_v37 }
 0x2f4   :  { %v955_v47 = vpop.eup %954  ;;  %v607_v48 = vsub.f32 %v551_v35, %v587_v44  ;;  %v578_v49 = vsel %vm577_vm3, %v575_v41, %v572_v40 }
 0x2f5   :  { %v957_v50 = vpop.eup %956  ;;  %v606_v51 = vsub.f32 %v550_v45, %v578_v49  ;;  %v599_v52 = vmul.f32 0.6931472, %v955_v47 }
 0x2f6   :  { %v590_v55 = vmul.f32 0.6931472, %v957_v50 }
 0x2f7   :  { %v605_v57 = vsel %vm604_vm4, %v602_v53, %v599_v52  ;;  %v911_v59 = vpack.c.bf16 %v607_v48, %v606_v51 }
 0x2f8   :  { %v609_v60 = vsub.f32 %v553_v54, %v605_v57  ;;  %v596_v61 = vsel %vm595_vm5, %v593_v56, %v590_v55 }
 0x2f9   :  { %v608_v62 = vsub.f32 %v552_v58, %v596_v61  ;;  %912 = vmatprep.subr.bf16.mxu0 %v911_v59 }
 0x2fa   :  { %914 = vmatpush3.bf16.msra.mxu0 %v911_v59 }
 0x2fb   :  { %v915_v63 = vpack.c.bf16 %v609_v60, %v608_v62 }
 0x2fd   :  { %916 = vmatprep.subr.bf16.mxu0 %v915_v63 }
 0x2fe   :  { %918 = vmatpush3.bf16.msra.mxu0 %v915_v63 }
 0x301   :  { %869 = vmatmul.mubr.msk.f32.vlgmr.msra.gmra.mrb[12].mxu0 %vm117_vm0, %v50_v0 }
 0x3d4   :  { %v870_v2 = vpop.f32.mrb[12].mxu0 }
 0x3d5   :  { %v698_v4 = vadd.f32 %v870_v2, %v618_v1  ;;  %v692_v5 = vpop.f32.mrb[13].mxu0 }
 0x3d6   :  { %v693_v6 = vadd.f32 %v692_v5, %v613_v3 }
 0x3d7   :  { %v702_v7 = vmax.f32 %v698_v4, 0.0 }
 0x3d8   :  { %v701_v8 = vmax.f32 %v693_v6, 0.0 }
 0x3d9   :  { %704 = vst [vmem:[#allocation5 + $0x8] sm:$0xff] %v702_v7 }
 0x3da   :  { %703 = vst [vmem:[#allocation5] sm:$0xff] %v701_v8 }
 0x3db   :  { %991 = shalt.err (!%p988_p12)
}
 0x3dc   :  { %s992_s10 = scalar_lea.hbm %s1230_s3, 256 }
 0x3dd   :  { %p993_p13 = scmp.ne.s32.totalorder %s1230_s3, %s992_s10  ;;  %p996_p0 = scmp.lt.u32.totalorder %s992_s10, %s1230_s3 }
 0x3df   :  { %p998_p1 = pnand %p996_p0, %p993_p13 }
 0x3e1   :  { %1001 = shalt.err (!%p998_p1)
}
 0x3e2   :  { %716 = dma.vmem_to_hbm [thread:$0]  %s711_s2, 256, %s1230_s3, [#allocation4], %s1007_s22, %s1007_s22, %s1008_s23  }
 0x3e3   :  { %1004 = dma.done.wait [#allocation4], 256  }
 0x3e4   :  { %1005 = vsyncadd [#allocation4], 4294967040 }
 0x3e5   :  { %720 = vsyncpa [#allocation3], 1 }
 0x3e6   :  { %721 = vsyncpa [#allocation4], 1 }

</bundles_post_ra>
